<compile_context>
chip_gen: v5e
topology: v5e:2x2
jax: 0.10.0
libtpu: 0.0.40
codegen_flags: <defaults>
</compile_context>

<pallas_src>
from functools import partial

import jax
import jax.numpy as jnp
from jax import lax
from jax.experimental import pallas as pl
from jax.experimental.pallas import tpu as pltpu

EPS = 1e-5        # BatchNorm eps
SLOPE = 0.2       # LeakyReLU negative slope in GCN


# --------------------------------------------------------------------------
# Pass 1: fused projection (conv_state | conv_proj) + z accumulation.
#   grid = (B, hw_splits, n_tiles_per_split); z block resident across t axis.
# --------------------------------------------------------------------------
def _proj_kernel(x_ref, wsp_ref, bsp_ref, z_ref, *, num_s, tile, hw, mask_cols):
    t = pl.program_id(2)

    @pl.when(t == 0)
    def _init():
        z_ref[...] = jnp.zeros_like(z_ref)

    cdt = wsp_ref.dtype                        # MXU compute dtype (bf16 or f32)
    x = x_ref[0].astype(cdt)                   # (C, T)

    # One wide matmul for both projections, then slice rows into s and p.
    sp = jnp.dot(wsp_ref[...], x, preferred_element_type=jnp.float32)
    sp = jnp.maximum(sp + bsp_ref[...], 0.0)   # (num_s + num_n, T) f32

    if mask_cols:                              # static: only when HW was padded
        n_tps = pl.num_programs(2)
        col0 = (pl.program_id(1) * n_tps + t) * tile
        col = col0 + lax.broadcasted_iota(jnp.int32, sp.shape, 1)
        sp = jnp.where(col < hw, sp, 0.0)

    s = sp[:num_s].astype(cdt)                 # (num_s, T)
    p = sp[num_s:].astype(cdt)                 # (num_n, T)

    # z += s @ p^T : contract over the HW (lane) axis, no explicit transpose.
    z_ref[0, 0] += lax.dot_general(
        s, p, dimension_numbers=(((1,), (1,)), ((), ())),
        preferred_element_type=jnp.float32)


# --------------------------------------------------------------------------
# Pass 2: reverse projection + reassociated fc_2/blocker + residual.
#   f = zfc @ relu(Wr x + br) + bfc ;  out = x + f
# --------------------------------------------------------------------------
def _reproj_kernel(x_ref, zfc_ref, wr_ref, br_ref, bfc_ref, o_ref):
    cdt = wr_ref.dtype
    xf = x_ref[0]                              # (C, T) — original dtype
    r = jnp.maximum(
        jnp.dot(wr_ref[...], xf.astype(cdt),
                preferred_element_type=jnp.float32) + br_ref[...], 0.0)  # (num_n, T)
    f = jnp.dot(zfc_ref[0].astype(cdt), r.astype(cdt),
                preferred_element_type=jnp.float32) + bfc_ref[...]       # (C, T)
    o_ref[0] = (xf.astype(jnp.float32) + f).astype(o_ref.dtype)


# --------------------------------------------------------------------------
# Helpers
# --------------------------------------------------------------------------
def _const_spec(arr):
    # Constant block index across the whole grid -> weights stay resident
    # (fetched once, no re-DMA on later grid steps).
    nd = arr.ndim
    return pl.BlockSpec(arr.shape, lambda *_, _nd=nd: (0,) * _nd)


def _default_vmem_limit():
    """Generation-aware scoped-VMEM limit (conservative fallback 48 MiB)."""
    try:
        kind = jax.devices()[0].device_kind.lower()
    except Exception:
        return 48 * 1024 * 1024
    if "v7" in kind:                      # 64 MiB physical per TC
        return 48 * 1024 * 1024
    if "v5" in kind or "v6" in kind:      # 128 MiB parts
        return 100 * 1024 * 1024
    return 48 * 1024 * 1024


def _pick_tile(hw, tile_hw, vmem_limit):
    """Returns (tile, padded_hw, n_tiles). Tile is lane-aligned (x128) or full HW."""
    if tile_hw is None:
        tile_hw = 2048 if vmem_limit > 64 * 1024 * 1024 else 1024
    if hw <= tile_hw:
        return hw, hw, 1                                  # single full block
    t = max(128, (tile_hw // 128) * 128)                  # lane-aligned tile
    n = -(-hw // t)                                       # cdiv
    return t, n * t, n


def _gcn(z, w1, b1, w2):
    """GCN block on (B, num_s, num_n) — tiny, runs as plain XLA."""
    h = jnp.einsum('bsn,mn->bsm', z, w1) + b1[None, None, :]
    h = h + z
    h = jnp.where(h > 0, h, SLOPE * h)                    # LeakyReLU(0.2)
    return jnp.einsum('st,btn->bsn', w2, h)


# --------------------------------------------------------------------------
# Wrapper
# --------------------------------------------------------------------------
def glore_unit_pallas(x_nchw, params, *, compute_dtype=jnp.bfloat16,
                      tile_hw=None, hw_splits=None, vmem_limit_bytes=None):
    B, C, H, W = x_nchw.shape
    HW = H * W
    num_s = params['ws'].shape[0]
    num_n = params['wp'].shape[0]

    if vmem_limit_bytes is None:
        vmem_limit_bytes = _default_vmem_limit()
    T, HWp, n_tiles = _pick_tile(HW, tile_hw, vmem_limit_bytes)

    # Split of the pass-1 HW reduction (both v7x TCs busy even for B==1).
    if hw_splits is None:
        hw_splits = 2 if (B == 1 and n_tiles >= 2 and n_tiles % 2 == 0) else 1
    if hw_splits < 1 or n_tiles % hw_splits != 0:
        hw_splits = 1
    n_tps = n_tiles // hw_splits

    # (B, C, HW) directly from NCHW — a reshape, no relayout.
    x_bchw = x_nchw.reshape(B, C, HW)
    if HWp != HW:
        x_bchw = jnp.pad(x_bchw, ((0, 0), (0, 0), (0, HWp - HW)))
    # bf16 x for pass 1 (pass 2 keeps the original-precision x for the residual).
    if jnp.dtype(compute_dtype).itemsize < jnp.dtype(x_bchw.dtype).itemsize:
        x_p1 = x_bchw.astype(compute_dtype)
    else:
        x_p1 = x_bchw

    # Fold eval-mode BN (mean=0, var=1) + conv bias into (C_out, C_in) weight
    # and a (C_out, 1) shift.  TODO(synk): use checkpoint running stats here.
    def fold_cbr(w, b, gamma, beta):
        scale = gamma / jnp.sqrt(1.0 + EPS)
        w_eff = (w * scale[:, None]).astype(compute_dtype)        # (C_out, C_in)
        b_eff = ((b * scale + beta)[:, None]).astype(jnp.float32)  # (C_out, 1)
        return w_eff, b_eff

    ws_w, ws_b = fold_cbr(params['ws'], params['bs_c'], params['gs'], params['betas'])
    wp_w, wp_b = fold_cbr(params['wp'], params['bp_c'], params['gp'], params['betap'])
    wr_w, wr_b = fold_cbr(params['wr'], params['br_c'], params['gr'], params['betar'])

    # Fused conv_state|conv_proj weight: one wide MXU matmul in pass 1.
    wsp = jnp.concatenate([ws_w, wp_w], axis=0)     # (num_s+num_n, C)
    bsp = jnp.concatenate([ws_b, wp_b], axis=0)     # (num_s+num_n, 1)

    # ---- Pass 1: partial z accumulation -------------------------------------
    kernel1 = partial(_proj_kernel, num_s=num_s, tile=T, hw=HW,
                      mask_cols=(HWp != HW))
    z_partial = pl.pallas_call(
        kernel1,
        out_shape=jax.ShapeDtypeStruct((B, hw_splits, num_s, num_n), jnp.float32),
        grid=(B, hw_splits, n_tps),
        in_specs=[pl.BlockSpec((1, C, T),
                               lambda b, sp, t, _n=n_tps: (b, 0, sp * _n + t)),
                  _const_spec(wsp), _const_spec(bsp)],
        out_specs=pl.BlockSpec((1, 1, num_s, num_n),
                               lambda b, sp, t: (b, sp, 0, 0)),
        compiler_params=pltpu.CompilerParams(
            dimension_semantics=("parallel", "parallel", "arbitrary"),
            vmem_limit_bytes=vmem_limit_bytes),
    )(x_p1, wsp, bsp)

    # ---- Tiny graph-space math in plain JAX ----------------------------------
    z = z_partial.sum(axis=1) * (1.0 / HW)          # (B, num_s, num_n) f32
    z = _gcn(z, params['g1w1'], params['g1b1'], params['g1w2'])
    z = _gcn(z, params['g2w1'], params['g2b1'], params['g2w2'])

    # Reassociate pass 2: zfc = (fc_2 ∘ blocker-scale) @ z  -> (B, C, num_n).
    scale_fc = params['gfc'] / jnp.sqrt(1.0 + EPS)
    wfc_eff = params['wfc'] * scale_fc[:, None]                     # (C, num_s) f32
    zfc = jnp.einsum('cs,bsn->bcn', wfc_eff, z).astype(jnp.float32)  # (B, C, num_n)
    bfc = params['betafc'][:, None].astype(jnp.float32)              # (C, 1)

    # ---- Pass 2: out = x + zfc @ relu(Wr x + br) + bfc -----------------------
    out_pad = pl.pallas_call(
        _reproj_kernel,
        out_shape=jax.ShapeDtypeStruct((B, C, HWp), x_nchw.dtype),
        grid=(B, n_tiles),
        in_specs=[pl.BlockSpec((1, C, T), lambda b, t: (b, 0, t)),
                  pl.BlockSpec((1, C, num_n), lambda b, t: (b, 0, 0)),
                  _const_spec(wr_w), _const_spec(wr_b), _const_spec(bfc)],
        out_specs=pl.BlockSpec((1, C, T), lambda b, t: (b, 0, t)),
        compiler_params=pltpu.CompilerParams(
            dimension_semantics=("parallel", "parallel"),
            vmem_limit_bytes=vmem_limit_bytes),
    )(x_bchw, zfc, wr_w, wr_b, bfc)

    out = out_pad[:, :, :HW] if HWp != HW else out_pad
    return out.reshape(B, C, H, W)


# --------------------------------------------------------------------------
# Parameters + pure-JAX reference (mirrors the PyTorch forward, eval-mode BN)
# --------------------------------------------------------------------------
def init_params(key, num_in, num_mid):
    num_s, num_n = 2 * num_mid, num_mid
    ks = jax.random.split(key, 20)
    n = lambda k, shape, s=0.1: s * jax.random.normal(k, shape, jnp.float32)
    p = {}
    # conv_state / conv_proj / conv_reproj : Conv2d(1x1)+BN+ReLU
    p['ws'], p['bs_c'] = n(ks[0], (num_s, num_in)), n(ks[1], (num_s,))
    p['gs'] = 1.0 + 0.02 * jax.random.normal(ks[2], (num_s,), jnp.float32)
    p['betas'] = n(ks[3], (num_s,), 0.05)
    p['wp'], p['bp_c'] = n(ks[4], (num_n, num_in)), n(ks[5], (num_n,))
    p['gp'] = 1.0 + 0.02 * jax.random.normal(ks[6], (num_n,), jnp.float32)
    p['betap'] = n(ks[7], (num_n,), 0.05)
    p['wr'], p['br_c'] = n(ks[8], (num_n, num_in)), n(ks[9], (num_n,))
    p['gr'] = 1.0 + 0.02 * jax.random.normal(ks[10], (num_n,), jnp.float32)
    p['betar'] = n(ks[11], (num_n,), 0.05)
    # GCNs (Conv1d 1x1 weights)
    p['g1w1'], p['g1b1'] = n(ks[12], (num_n, num_n)), n(ks[13], (num_n,))
    p['g1w2'] = n(ks[14], (num_s, num_s))
    p['g2w1'], p['g2b1'] = n(ks[15], (num_n, num_n)), n(ks[16], (num_n,))
    p['g2w2'] = n(ks[17], (num_s, num_s))
    # fc_2 (no bias) + blocker BN
    p['wfc'] = n(ks[18], (num_in, num_s))
    p['gfc'] = 1.0 + 0.02 * jax.random.normal(ks[19], (num_in,), jnp.float32)
    p['betafc'] = jnp.zeros((num_in,), jnp.float32)
    return p


def ref_forward(x, p):
    """Pure-JAX reference mirroring the PyTorch forward (eval-mode BN)."""
    B, C, H, W = x.shape
    HW = H * W
    xf = x.reshape(B, C, HW).astype(jnp.float32)

    def conv_bn_relu(w, b, gamma, beta):
        y = jnp.einsum('oc,bch->boh', w, xf) + b[None, :, None]
        y = y * (gamma / jnp.sqrt(1.0 + EPS))[None, :, None] + beta[None, :, None]
        return jnp.maximum(y, 0.0)

    s = conv_bn_relu(p['ws'], p['bs_c'], p['gs'], p['betas'])
    pr = conv_bn_relu(p['wp'], p['bp_c'], p['gp'], p['betap'])
    r = conv_bn_relu(p['wr'], p['br_c'], p['gr'], p['betar'])

    z = jnp.einsum('bsh,bnh->bsn', s, pr) * (1.0 / HW)
    z = _gcn(z, p['g1w1'], p['g1b1'], p['g1w2'])
    z = _gcn(z, p['g2w1'], p['g2b1'], p['g2w2'])

    y = jnp.einsum('bsn,bnh->bsh', z, r)
    f = jnp.einsum('os,bsh->boh', p['wfc'], y)
    f = f * (p['gfc'] / jnp.sqrt(1.0 + EPS))[None, :, None] \
        + p['betafc'][None, :, None]
    return x + f.reshape(B, C, H, W)


if __name__ == "__main__":
    key = jax.random.PRNGKey(0)
    kx, kp, kx2 = jax.random.split(key, 3)

    glore = jax.jit(glore_unit_pallas,
                    static_argnames=("compute_dtype", "tile_hw", "hw_splits",
                                     "vmem_limit_bytes"))

    # ---- Config A: B=2, C=4, 16x16 (HW=256, even tiles) ----------------------
    B, C, H, W = 2, 4, 16, 16
    num_mid = 4                                # num_s = 8, num_n = 4
    x = jax.random.normal(kx, (B, C, H, W), jnp.float32)
    params = init_params(kp, C, num_mid)
    ref = ref_forward(x, params)

    # f32 path, 2-tile accumulation + 2-way HW split of the reduction.
    out_f32 = jax.block_until_ready(
        glore(x, params, compute_dtype=jnp.float32, tile_hw=128, hw_splits=2))
    assert out_f32.shape == x.shape
    assert jnp.allclose(out_f32, ref, atol=1e-4, rtol=1e-4), \
        float(jnp.max(jnp.abs(out_f32 - ref)))

    # bf16 MXU path (f32 accumulation, exact residual).
    out_bf16 = jax.block_until_ready(
        glore(x, params, compute_dtype=jnp.bfloat16, tile_hw=128))
    assert jnp.allclose(out_bf16, ref, atol=2e-2, rtol=2e-2), \
        float(jnp.max(jnp.abs(out_bf16 - ref)))

    # Default tiling path (single full-HW block).
    out_def = jax.block_until_ready(glore(x, params, compute_dtype=jnp.float32))
    assert jnp.allclose(out_def, ref, atol=1e-4, rtol=1e-4), \
        float(jnp.max(jnp.abs(out_def - ref)))

    # ---- Config B: B=1, 18x18 (HW=324 -> padded to 384, masked last tile) ----
    B2, H2, W2 = 1, 18, 18
    x2 = jax.random.normal(kx2, (B2, C, H2, W2), jnp.float32)
    ref2 = ref_forward(x2, params)
    out2 = jax.block_until_ready(
        glore(x2, params, compute_dtype=jnp.float32, tile_hw=128))
    assert out2.shape == x2.shape
    assert jnp.allclose(out2, ref2, atol=1e-4, rtol=1e-4), \
        float(jnp.max(jnp.abs(out2 - ref2)))

    print("KERNEL_OK")
</pallas_src>

<mosaic_0001>
module attributes {stable_mosaic.version = 11 : i64} {
  func.func @_proj_kernel(%arg0: i32, %arg1: i32, %arg2: i32, %arg3: memref<1x4x128xf32, #tpu.memory_space<vmem>>, %arg4: memref<12x4xf32, #tpu.memory_space<vmem>>, %arg5: memref<12x1xf32, #tpu.memory_space<vmem>>, %arg6: memref<1x1x8x4xf32, #tpu.memory_space<vmem>>) attributes {dimension_semantics = [#tpu.dimension_semantics<parallel>, #tpu.dimension_semantics<parallel>, #tpu.dimension_semantics<arbitrary>], iteration_bounds = array<i64: 2, 2, 1>, scalar_prefetch = 0 : i64, scratch_operands = 0 : i64, tpu.core_type = #tpu.core_type<tc>, window_params = [{transform_indices = @transform_0, window_bounds = array<i64: 1, 4, 128>}, {pipeline_mode = #tpu.pipeline_mode<synchronous>, transform_indices = @transform_1, window_bounds = array<i64: 12, 4>}, {pipeline_mode = #tpu.pipeline_mode<synchronous>, transform_indices = @transform_2, window_bounds = array<i64: 12, 1>}, {transform_indices = @transform_3, window_bounds = array<i64: 1, 1, 8, 4>}]} {
    %c0_i32 = arith.constant 0 : i32
    %0 = arith.cmpi eq, %arg2, %c0_i32 : i32
    %1 = arith.extui %0 : i1 to i32
    %c0_i32_0 = arith.constant 0 : i32
    %2 = arith.cmpi ne, %1, %c0_i32_0 : i32
    scf.if %2 {
      %cst_17 = arith.constant 0.000000e+00 : f32
      %21 = vector.broadcast %cst_17 : f32 to vector<1x1x8x4xf32>
      %c0_18 = arith.constant 0 : index
      %c0_19 = arith.constant 0 : index
      %c0_20 = arith.constant 0 : index
      %c0_21 = arith.constant 0 : index
      %22 = vector.load %arg6[%c0_18, %c0_19, %c0_20, %c0_21] : memref<1x1x8x4xf32, #tpu.memory_space<vmem>>, vector<1x1x8x4xf32>
      tpu.vector_store %arg6[%c0_18, %c0_19, %c0_20, %c0_21], %21 {strides = array<i32>} : memref<1x1x8x4xf32, #tpu.memory_space<vmem>>, vector<1x1x8x4xf32>,
    } else {
    }
    %c0 = arith.constant 0 : index
    %c0_1 = arith.constant 0 : index
    %c0_2 = arith.constant 0 : index
    %3 = vector.load %arg3[%c0, %c0_1, %c0_2] : memref<1x4x128xf32, #tpu.memory_space<vmem>>, vector<1x4x128xf32>
    %4 = vector.shape_cast %3 : vector<1x4x128xf32> to vector<4x128xf32>
    %c0_3 = arith.constant 0 : index
    %c0_4 = arith.constant 0 : index
    %5 = vector.load %arg4[%c0_3, %c0_4] : memref<12x4xf32, #tpu.memory_space<vmem>>, vector<12x4xf32>
    %cst = arith.constant dense<0.000000e+00> : vector<12x128xf32>
    %6 = tpu.matmul %5, %4, %cst {dimension_numbers = #tpu.dot_dimension_numbers<[1], [0], [0], [1], [0, 0, 1, 1], [], []>} : vector<12x4xf32>, vector<4x128xf32>, vector<12x128xf32> -> vector<12x128xf32>
    %c0_5 = arith.constant 0 : index
    %c0_6 = arith.constant 0 : index
    %7 = vector.load %arg5[%c0_5, %c0_6] : memref<12x1xf32, #tpu.memory_space<vmem>>, vector<12x1xf32>
    %8 = vector.broadcast %7 : vector<12x1xf32> to vector<12x128xf32>
    %9 = arith.addf %6, %8 : vector<12x128xf32>
    %cst_7 = arith.constant 0.000000e+00 : f32
    %10 = vector.broadcast %cst_7 : f32 to vector<12x128xf32>
    %11 = arith.maximumf %9, %10 : vector<12x128xf32>
    %12 = vector.extract_strided_slice %11 {offsets = [0, 0], sizes = [8, 128], strides = [1, 1]} : vector<12x128xf32> to vector<8x128xf32>
    %13 = vector.extract_strided_slice %11 {offsets = [8, 0], sizes = [4, 128], strides = [1, 1]} : vector<12x128xf32> to vector<4x128xf32>
    %c0_8 = arith.constant 0 : index
    %c0_9 = arith.constant 0 : index
    %c0_10 = arith.constant 0 : index
    %c0_11 = arith.constant 0 : index
    %14 = vector.load %arg6[%c0_8, %c0_9, %c0_10, %c0_11] : memref<1x1x8x4xf32, #tpu.memory_space<vmem>>, vector<1x1x8x4xf32>
    %15 = vector.shape_cast %14 : vector<1x1x8x4xf32> to vector<8x4xf32>
    %cst_12 = arith.constant dense<0.000000e+00> : vector<8x4xf32>
    %16 = tpu.matmul %12, %13, %cst_12 {dimension_numbers = #tpu.dot_dimension_numbers<[1], [1], [0], [0], [0, 0, 1, 0], [], []>} : vector<8x128xf32>, vector<4x128xf32>, vector<8x4xf32> -> vector<8x4xf32>
    %17 = arith.addf %15, %16 : vector<8x4xf32>
    %c0_13 = arith.constant 0 : index
    %c0_14 = arith.constant 0 : index
    %c0_15 = arith.constant 0 : index
    %c0_16 = arith.constant 0 : index
    %18 = vector.load %arg6[%c0_13, %c0_14, %c0_15, %c0_16] : memref<1x1x8x4xf32, #tpu.memory_space<vmem>>, vector<1x1x8x4xf32>
    %19 = vector.shape_cast %18 : vector<1x1x8x4xf32> to vector<8x4xf32>
    %20 = vector.shape_cast %17 : vector<8x4xf32> to vector<1x1x8x4xf32>
    tpu.vector_store %arg6[%c0_13, %c0_14, %c0_15, %c0_16], %20 {strides = array<i32>} : memref<1x1x8x4xf32, #tpu.memory_space<vmem>>, vector<1x1x8x4xf32>,
    return
  }
  func.func @transform_0(%arg0: i32, %arg1: i32, %arg2: i32) -> (i32, i32, i32) {
    %c1_i32 = arith.constant 1 : i32
    %0 = arith.muli %arg1, %c1_i32 : i32
    %1 = arith.addi %0, %arg2 : i32
    %c0_i32 = arith.constant 0 : i32
    %c0_i32_0 = arith.constant 0 : i32
    return %arg0, %c0_i32, %1 : i32, i32, i32
  }
  func.func @transform_1(%arg0: i32, %arg1: i32, %arg2: i32) -> (i32, i32) {
    %c0_i32 = arith.constant 0 : i32
    %c0_i32_0 = arith.constant 0 : i32
    %c0_i32_1 = arith.constant 0 : i32
    return %c0_i32, %c0_i32_0 : i32, i32
  }
  func.func @transform_2(%arg0: i32, %arg1: i32, %arg2: i32) -> (i32, i32) {
    %c0_i32 = arith.constant 0 : i32
    %c0_i32_0 = arith.constant 0 : i32
    %c0_i32_1 = arith.constant 0 : i32
    return %c0_i32, %c0_i32_0 : i32, i32
  }
  func.func @transform_3(%arg0: i32, %arg1: i32, %arg2: i32) -> (i32, i32, i32, i32) {
    %c0_i32 = arith.constant 0 : i32
    %c0_i32_0 = arith.constant 0 : i32
    %c0_i32_1 = arith.constant 0 : i32
    return %arg0, %arg1, %c0_i32, %c0_i32_0 : i32, i32, i32, i32
  }
}

module attributes {stable_mosaic.version = 11 : i64} {
  func.func @_reproj_kernel(%arg0: i32, %arg1: i32, %arg2: memref<1x4x128xf32, #tpu.memory_space<vmem>>, %arg3: memref<1x4x4xf32, #tpu.memory_space<vmem>>, %arg4: memref<4x4xf32, #tpu.memory_space<vmem>>, %arg5: memref<4x1xf32, #tpu.memory_space<vmem>>, %arg6: memref<4x1xf32, #tpu.memory_space<vmem>>, %arg7: memref<1x4x128xf32, #tpu.memory_space<vmem>>) attributes {dimension_semantics = [#tpu.dimension_semantics<parallel>, #tpu.dimension_semantics<parallel>], iteration_bounds = array<i64: 2, 2>, scalar_prefetch = 0 : i64, scratch_operands = 0 : i64, tpu.core_type = #tpu.core_type<tc>, window_params = [{transform_indices = @transform_0, window_bounds = array<i64: 1, 4, 128>}, {transform_indices = @transform_1, window_bounds = array<i64: 1, 4, 4>}, {pipeline_mode = #tpu.pipeline_mode<synchronous>, transform_indices = @transform_2, window_bounds = array<i64: 4, 4>}, {pipeline_mode = #tpu.pipeline_mode<synchronous>, transform_indices = @transform_3, window_bounds = array<i64: 4, 1>}, {pipeline_mode = #tpu.pipeline_mode<synchronous>, transform_indices = @transform_4, window_bounds = array<i64: 4, 1>}, {transform_indices = @transform_5, window_bounds = array<i64: 1, 4, 128>}]} {
    %c0 = arith.constant 0 : index
    %c0_0 = arith.constant 0 : index
    %c0_1 = arith.constant 0 : index
    %0 = vector.load %arg2[%c0, %c0_0, %c0_1] : memref<1x4x128xf32, #tpu.memory_space<vmem>>, vector<1x4x128xf32>
    %1 = vector.shape_cast %0 : vector<1x4x128xf32> to vector<4x128xf32>
    %c0_2 = arith.constant 0 : index
    %c0_3 = arith.constant 0 : index
    %2 = vector.load %arg4[%c0_2, %c0_3] : memref<4x4xf32, #tpu.memory_space<vmem>>, vector<4x4xf32>
    %cst = arith.constant dense<0.000000e+00> : vector<4x128xf32>
    %3 = tpu.matmul %2, %1, %cst {dimension_numbers = #tpu.dot_dimension_numbers<[1], [0], [0], [1], [0, 0, 1, 1], [], []>} : vector<4x4xf32>, vector<4x128xf32>, vector<4x128xf32> -> vector<4x128xf32>
    %c0_4 = arith.constant 0 : index
    %c0_5 = arith.constant 0 : index
    %4 = vector.load %arg5[%c0_4, %c0_5] : memref<4x1xf32, #tpu.memory_space<vmem>>, vector<4x1xf32>
    %5 = vector.broadcast %4 : vector<4x1xf32> to vector<4x128xf32>
    %6 = arith.addf %3, %5 : vector<4x128xf32>
    %cst_6 = arith.constant 0.000000e+00 : f32
    %7 = vector.broadcast %cst_6 : f32 to vector<4x128xf32>
    %8 = arith.maximumf %6, %7 : vector<4x128xf32>
    %c0_7 = arith.constant 0 : index
    %c0_8 = arith.constant 0 : index
    %c0_9 = arith.constant 0 : index
    %9 = vector.load %arg3[%c0_7, %c0_8, %c0_9] : memref<1x4x4xf32, #tpu.memory_space<vmem>>, vector<1x4x4xf32>
    %10 = vector.shape_cast %9 : vector<1x4x4xf32> to vector<4x4xf32>
    %cst_10 = arith.constant dense<0.000000e+00> : vector<4x128xf32>
    %11 = tpu.matmul %10, %8, %cst_10 {dimension_numbers = #tpu.dot_dimension_numbers<[1], [0], [0], [1], [0, 0, 1, 1], [], []>} : vector<4x4xf32>, vector<4x128xf32>, vector<4x128xf32> -> vector<4x128xf32>
    %c0_11 = arith.constant 0 : index
    %c0_12 = arith.constant 0 : index
    %12 = vector.load %arg6[%c0_11, %c0_12] : memref<4x1xf32, #tpu.memory_space<vmem>>, vector<4x1xf32>
    %13 = vector.broadcast %12 : vector<4x1xf32> to vector<4x128xf32>
    %14 = arith.addf %11, %13 : vector<4x128xf32>
    %15 = arith.addf %1, %14 : vector<4x128xf32>
    %c0_13 = arith.constant 0 : index
    %c0_14 = arith.constant 0 : index
    %c0_15 = arith.constant 0 : index
    %16 = vector.load %arg7[%c0_13, %c0_14, %c0_15] : memref<1x4x128xf32, #tpu.memory_space<vmem>>, vector<1x4x128xf32>
    %17 = vector.shape_cast %16 : vector<1x4x128xf32> to vector<4x128xf32>
    %18 = vector.shape_cast %15 : vector<4x128xf32> to vector<1x4x128xf32>
    tpu.vector_store %arg7[%c0_13, %c0_14, %c0_15], %18 {strides = array<i32>} : memref<1x4x128xf32, #tpu.memory_space<vmem>>, vector<1x4x128xf32>,
    return
  }
  func.func @transform_0(%arg0: i32, %arg1: i32) -> (i32, i32, i32) {
    %c0_i32 = arith.constant 0 : i32
    %c0_i32_0 = arith.constant 0 : i32
    return %arg0, %c0_i32, %arg1 : i32, i32, i32
  }
  func.func @transform_1(%arg0: i32, %arg1: i32) -> (i32, i32, i32) {
    %c0_i32 = arith.constant 0 : i32
    %c0_i32_0 = arith.constant 0 : i32
    %c0_i32_1 = arith.constant 0 : i32
    return %arg0, %c0_i32, %c0_i32_0 : i32, i32, i32
  }
  func.func @transform_2(%arg0: i32, %arg1: i32) -> (i32, i32) {
    %c0_i32 = arith.constant 0 : i32
    %c0_i32_0 = arith.constant 0 : i32
    %c0_i32_1 = arith.constant 0 : i32
    return %c0_i32, %c0_i32_0 : i32, i32
  }
  func.func @transform_3(%arg0: i32, %arg1: i32) -> (i32, i32) {
    %c0_i32 = arith.constant 0 : i32
    %c0_i32_0 = arith.constant 0 : i32
    %c0_i32_1 = arith.constant 0 : i32
    return %c0_i32, %c0_i32_0 : i32, i32
  }
  func.func @transform_4(%arg0: i32, %arg1: i32) -> (i32, i32) {
    %c0_i32 = arith.constant 0 : i32
    %c0_i32_0 = arith.constant 0 : i32
    %c0_i32_1 = arith.constant 0 : i32
    return %c0_i32, %c0_i32_0 : i32, i32
  }
  func.func @transform_5(%arg0: i32, %arg1: i32) -> (i32, i32, i32) {
    %c0_i32 = arith.constant 0 : i32
    %c0_i32_0 = arith.constant 0 : i32
    return %arg0, %c0_i32, %arg1 : i32, i32, i32
  }
}

</mosaic_0001>

<bundles_post_ra>
// kernel: glore_unit_pallas.2
= control target key start
LH: loop header
LB: loop body
LE: loop exit
PB: predicated region body
PF: predicated region fallthrough
CT: control target
= control target key end

     0   :  { %s505_s12 = smov 0   ;;  %s507_s13 = smov 0   ;;  %s572_s0 = inlined_call_operand.vmem [shape: f32[2,4,256], index: 0, kind: input, shape index: {}]   ;;  %s573_s1 = inlined_call_operand.vmem [shape: f32[12,4], index: 1, kind: input, shape index: {}]   ;;  %s574_s2 = inlined_call_operand.vmem [shape: f32[12,1], index: 2, kind: input, shape index: {}]   ;;  %s575_s3 = inlined_call_operand.vmem [shape: f32[2,2,8,4], index: 3, kind: output, shape index: {}]  }
   0x1   :  { %s509_s14 = smov 0   ;;  %s511_s15 = smov 0  }
   0x2   :  { %s513_s16 = smov 0  }
   0x3 LB: > { %s28_s17 = sadd.s32 1, %s473_s14  ;;  %s32_s18 = sadd.s32 1, %s477_s15  ;;  %s481_s16 = sphi %s513_s16, %s13_s16   ;;  %s477_s15 = sphi %s511_s15, %s579_s15   ;;  %s473_s14 = sphi %s509_s14, %s578_s14   ;;  %s469_s13 = sphi %s507_s13, %s577_s13   ;;  %s465_s12 = sphi %s505_s12, %s576_s12  }
   0x4   : > { %p30_p0 = scmp.ge.s32.totalorder %s28_s17, 2  ;;  %p389_p1 = scmp.ge.s32.totalorder %s481_s16, 1 }
   0x5   : > { %p167_p2 = scmp.lt.s32.totalorder %s481_s16, 5 }
   0x6   : > { %s581_s17 = smov (%p30_p0, %s28_s17), 0  ;;  %s583_s18 = smov (!%p30_p0, %s32_s18), %s477_s15 }
   0x7   : > { %p168_p3 = pnand %p389_p1, %p167_p2  ;;  %p34_p4 = scmp.ge.s32.totalorder %s583_s18, 2 }
   0x8   : > { %p199_p5 = scmp.lt.s32.totalorder (!%p168_p3), %s469_s13, 1  ;;  %p201_p6 = scmp.lt.s32.totalorder (!%p168_p3), %s465_s12, 1 }
   0x9   : > { %s585_s18 = smov (%p34_p4, %s583_s18), 0  ;;  %171 = sbr.rel (%p168_p3) target bundleno = 289 (0x121), region = 32 }
   0xe   : > { %v226_v0 = vld [vmem:[%s574_s2 + $0x8] sm:$0xf]  ;;  %s587_s13 = smov (!%p199_p5, %s469_s13), 1  ;;  %v483_v1 = vmov 0   ;;  %s589_s12 = smov (!%p201_p6, %s465_s12), 1  ;;  %vm244_vm0 = vcmask 1043456  }
   0xf   : > { %442 = vset.pattern.permute.xlu0 %v483_v1  ;;  %s390_s21 = sshll.u32 %s587_s13, 1  ;;  %vm220_vm1 = vcmask 31744   ;;  %v224_v2 = vld [vmem:[%s573_s1 + $0x8] sm:$0xf]  ;;  %v223_v3 = vld [vmem:[%s573_s1] sm:$0xff]  ;;  %v484_v5 = vmov 0.0  }
  0x10   : > { %234 = vperm.xlu0 %442, %v226_v0   ;;  %s204_s22 = sadd.s32 %s390_s21, %s589_s12  ;;  %v225_v6 = vld [vmem:[%s574_s2] sm:$0xff] }
  0x11   : > { %s391_s23 = sshll.u32 %s204_s22, 2  ;;  %s393_s24 = sshll.u32 %s204_s22, 3 }
  0x12   : > { %s206_s27 = scalar_lea.vmem %s572_s0, %s391_s23  ;;  %s215_s30 = scalar_lea.vmem %s575_s3, %s393_s24 }
  0x13   : > { %v222_v4 = vld [vmem:[%s206_s27] sm:$0xf]  ;;  %221 = vst.msk [vmem:[%s215_s30] sm:$0xff] %vm220_vm1, %v484_v5 }
  0x14   : > { %399 = vmatpush.msk.msra.mxu2 %vm244_vm0, %v222_v4  ;;  %394 = vmatpush.msk.msra.mxu0 %vm244_vm0, %v222_v4 }
  0x15   : > { %396 = vmatmul.msk.f32.vlgmr.msra.gmra.mxu2 %vm220_vm1, %v224_v2  ;;  %395 = vmatmul.msk.f32.vlgmr.msra.gmra.mxu0 %vm220_vm1, %v223_v3 }
  0x18   : > { %229 = vperm.xlu0 %442, %v225_v6  }
  0x1a   : > { %v273_v15 = vld [vmem:[%s215_s30] sm:$0xff] }
  0x82   : > { %v235_v7 = vpop.permute.xlu0 %234 }
  0x8a   : > { %v230_v8 = vpop.permute.xlu0 %229 }
  0x92   : > { %v265_v9 = vpop.f32.mrf.mxu0 }
  0x93   : > { %v266_v12 = vadd.f32 %v265_v9, %v230_v8 }
  0x95   : > { %v271_v14 = vmax.f32 %v266_v12, 0.0 }
  0x98   : > { %v268_v10 = vpop.f32.mrf.mxu2 }
  0x99   : > { %v269_v11 = vadd.f32 %v268_v10, %v235_v7 }
  0x9b   : > { %v272_v13 = vmax.f32 %v269_v11, 0.0 }
  0x9d   : > { %289 = vmatpush.xpose.msra.mxu1 %v272_v13 }
  0xa0   : > { %290 = vmatmul.f32.vlgmr.msra.gmra.mxu1 %v271_v14 }
 0x11d   : > { %v291_v16 = vpop.f32.mrf.mxu1 }
 0x11e   : > { %v294_v17 = vadd.f32 %v291_v16, %v273_v15 }
 0x120   : > { %295 = vst.msk [vmem:[%s215_s30] sm:$0xff] %vm220_vm1, %v294_v17 }
 0x121 PF: > { %s13_s16 = sadd.s32 1, %s481_s16   ;;  %s576_s12 = smov %s473_s14 }
 0x122   : > { %p10_p7 = scmp.ge.s32.totalorder %s13_s16, 6   ;;  %s577_s13 = smov %s477_s15 }
 0x123   : > { %s578_s14 = smov %s581_s17  ;;  %s579_s15 = smov %s585_s18 }
 0x124   :  { %12 = sbr.rel (!%p10_p7) target bundleno = 3 (0x3), region = 66 }

// kernel: glore_unit_pallas.3
= control target key start
LH: loop header
LB: loop body
LE: loop exit
PB: predicated region body
PF: predicated region fallthrough
CT: control target
= control target key end

     0   :  { %s572_s18 = smov 0   ;;  %s574_s19 = smov 0   ;;  %s637_s0 = inlined_call_operand.vmem [shape: f32[2,4,256], index: 0, kind: input, shape index: {}]   ;;  %s638_s1 = inlined_call_operand.vmem [shape: f32[2,4,4], index: 1, kind: input, shape index: {}]   ;;  %s639_s2 = inlined_call_operand.vmem [shape: f32[4,4], index: 2, kind: input, shape index: {}]   ;;  %s640_s3 = inlined_call_operand.vmem [shape: f32[4,1], index: 3, kind: input, shape index: {}]   ;;  %s641_s4 = inlined_call_operand.vmem [shape: f32[4,1], index: 4, kind: input, shape index: {}]   ;;  %s642_s5 = inlined_call_operand.vmem [shape: f32[2,4,256], index: 5, kind: output, shape index: {}]  }
   0x1   :  { %s576_s20 = smov 0   ;;  %s578_s21 = smov 0  }
   0x2   :  { %s580_s22 = smov 0  }
   0x3 LB: > { %s24_s23 = sadd.s32 1, %s531_s20  ;;  %s27_s24 = sadd.s32 1, %s535_s21  ;;  %s539_s22 = sphi %s580_s22, %s15_s22   ;;  %s535_s21 = sphi %s578_s21, %s646_s21   ;;  %s531_s20 = sphi %s576_s20, %s645_s20   ;;  %s527_s19 = sphi %s574_s19, %s644_s19   ;;  %s523_s18 = sphi %s572_s18, %s643_s18  }
   0x4   : > { %p25_p0 = scmp.ge.s32.totalorder %s24_s23, 2  ;;  %p447_p1 = scmp.ge.s32.totalorder %s539_s22, 1 }
   0x5   : > { %p215_p2 = scmp.lt.s32.totalorder %s539_s22, 5 }
   0x6   : > { %s648_s23 = smov (%p25_p0, %s24_s23), 0  ;;  %s650_s24 = smov (!%p25_p0, %s27_s24), %s535_s21 }
   0x7   : > { %p216_p3 = pnand %p447_p1, %p215_p2  ;;  %p29_p4 = scmp.ge.s32.totalorder %s650_s24, 2 }
   0x8   : > { %p253_p5 = scmp.lt.s32.totalorder (!%p216_p3), %s527_s19, 1  ;;  %p255_p6 = scmp.lt.s32.totalorder (!%p216_p3), %s523_s18, 1 }
   0x9   : > { %s652_s24 = smov (%p29_p4, %s650_s24), 0  ;;  %219 = sbr.rel (%p216_p3) target bundleno = 283 (0x11b), region = 40 }
   0xe   : > { %v275_v0 = vld [vmem:[%s640_s3] sm:$0xf]  ;;  %s654_s19 = smov (!%p253_p5, %s527_s19), 1  ;;  %v541_v1 = vmov 0   ;;  %s656_s18 = smov (!%p255_p6, %s523_s18), 1  ;;  %vm285_vm0 = vcmask 1043456  }
   0xf   : > { %500 = vset.pattern.permute.xlu0 %v541_v1  ;;  %s448_s27 = sshll.u32 %s654_s19, 1  ;;  %v274_v2 = vld [vmem:[%s639_s2] sm:$0xf]  ;;  %vm281_vm1 = vcmask 31744   ;;  %s450_s12 = sshll.u32 %s654_s19, 2 }
  0x10   : > { %278 = vperm.xlu0 %500, %v275_v0   ;;  %s258_s28 = sadd.s32 %s448_s27, %s656_s18  ;;  %v311_v4 = vld [vmem:[%s641_s4] sm:$0xf]  ;;  %s264_s15 = scalar_lea.vmem %s638_s1, %s450_s12 }
  0x11   : > { %s449_s29 = sshll.u32 %s258_s28, 2  ;;  %v310_v9 = vld [vmem:[%s264_s15] sm:$0xf] }
  0x12   : > { %s260_s7 = scalar_lea.vmem %s637_s0, %s449_s29  ;;  %s272_s18 = scalar_lea.vmem %s642_s5, %s449_s29 }
  0x13   : > { %v273_v3 = vld [vmem:[%s260_s7] sm:$0xf] }
  0x14   : > { %453 = vmatpush.msk.msra.mxu0 %vm285_vm0, %v273_v3 }
  0x15   : > { %454 = vmatmul.msk.f32.vlgmr.msra.gmra.mxu0 %vm281_vm1, %v274_v2 }
  0x18   : > { %314 = vperm.xlu0 %500, %v311_v4  }
  0x82   : > { %v279_v5 = vpop.permute.xlu0 %278 }
  0x8a   : > { %v315_v10 = vpop.permute.xlu0 %314 }
  0x92   : > { %v306_v6 = vpop.f32.mrf.mxu0 }
  0x93   : > { %v307_v7 = vadd.f32 %v306_v6, %v279_v5 }
  0x95   : > { %v309_v8 = vmax.f32 %v307_v7, 0.0 }
  0x97   : > { %455 = vmatpush.msk.msra.mxu1 %vm285_vm0, %v309_v8 }
  0x98   : > { %456 = vmatmul.msk.f32.vlgmr.msra.gmra.mxu1 %vm281_vm1, %v310_v9 }
 0x115   : > { %v340_v11 = vpop.f32.mrf.mxu1 }
 0x116   : > { %v341_v12 = vadd.f32 %v340_v11, %v315_v10 }
 0x118   : > { %v343_v13 = vadd.f32 %v341_v12, %v273_v3 }
 0x11a   : > { %344 = vst [vmem:[%s272_s18] sm:$0xf] %v343_v13 }
 0x11b PF: > { %s15_s22 = sadd.s32 1, %s539_s22   ;;  %s643_s18 = smov %s531_s20 }
 0x11c   : > { %p12_p7 = scmp.ge.s32.totalorder %s15_s22, 6   ;;  %s644_s19 = smov %s535_s21 }
 0x11d   : > { %s645_s20 = smov %s648_s23  ;;  %s646_s21 = smov %s652_s24 }
 0x11e   :  { %14 = sbr.rel (!%p12_p7) target bundleno = 3 (0x3), region = 73 }

</bundles_post_ra>
